<compile_context>
chip_gen: v5e
topology: v5e:2x2
jax: 0.10.0
libtpu: 0.0.40
codegen_flags: <defaults>
</compile_context>

<pallas_src>
import numpy as np
import jax
import jax.numpy as jnp
from jax.experimental import pallas as pl
from jax.experimental.pallas import tpu as pltpu


# ---------------------------------------------------------------------------
# Kernel 1: embedding gather (FeaturesEmbedding) via scalar-prefetch index maps
# ---------------------------------------------------------------------------
def _gather_kernel(idx_ref, *refs):
    del idx_ref  # indices are consumed by the index_maps only
    table_refs = refs[:-1]          # F refs, each (1, 1, E)
    out_ref = refs[-1]              # (1, 1, F*E)
    rows = [t[...] for t in table_refs]
    out_ref[...] = jnp.concatenate(rows, axis=-1)


def embedding_gather(table, idx):
    """table: (V, E) float; idx: (B, F) int32 global row ids. Returns (B, F*E)."""
    V, E = table.shape
    B, F = idx.shape
    table3d = table.reshape(V, 1, E)   # metadata-only reshape; blocks satisfy tiling rules

    def table_spec(f):
        return pl.BlockSpec((1, 1, E), lambda b, idx_ref, f=f: (idx_ref[b, f], 0, 0))

    out = pl.pallas_call(
        _gather_kernel,
        out_shape=jax.ShapeDtypeStruct((B, 1, F * E), table.dtype),
        grid_spec=pltpu.PrefetchScalarGridSpec(
            num_scalar_prefetch=1,
            grid=(B,),
            in_specs=[table_spec(f) for f in range(F)],
            out_specs=pl.BlockSpec((1, 1, F * E), lambda b, idx_ref: (b, 0, 0)),
        ),
        compiler_params=pltpu.CompilerParams(dimension_semantics=("arbitrary",)),
    )(idx.astype(jnp.int32), *([table3d] * F))
    return out.reshape(B, F * E)


# ---------------------------------------------------------------------------
# Kernel 2: fused NCF forward (GMF + context sum + MLP + final fc), tiled over batch
# ---------------------------------------------------------------------------
def _make_ncf_kernel(num_fields, embed_dim, num_layers, user_idx, item_idx):
    F, E = num_fields, embed_dim

    def kernel(*refs):
        emb_ref = refs[0]                                  # (TB, F*E)
        pos = 1
        layer_refs = []
        for _ in range(num_layers):
            layer_refs.append((refs[pos], refs[pos + 1]))  # (in,out), (1,out)
            pos += 2
        wg_ref, wh_ref, wc_ref, bfc_ref = refs[pos:pos + 4]
        out_ref = refs[pos + 4]                            # (TB, 1)

        emb = emb_ref[...].astype(jnp.float32)             # upcast in-vreg (bf16-friendly)

        user = emb[:, user_idx * E:(user_idx + 1) * E]
        item = emb[:, item_idx * E:(item_idx + 1) * E]
        gmf = user * item                                  # (TB, E)

        if F > 2:
            ctx = emb[:, 2 * E:3 * E]
            for f in range(3, F):
                ctx = ctx + emb[:, f * E:(f + 1) * E]      # (TB, E)
        else:
            ctx = jnp.zeros_like(gmf)

        # MLP: Linear (with eval-mode BatchNorm pre-folded) + ReLU, on the MXU.
        h = emb
        for w_ref, b_ref in layer_refs:
            h = jnp.dot(h, w_ref[...].astype(jnp.float32),
                        preferred_element_type=jnp.float32) + b_ref[...]
            h = jnp.maximum(h, 0.0)
            # TODO(synk): Dropout is inference-mode identity here (p is ignored).

        # fc on cat([gmf, mlp, ctx]) implemented as split-weight lane reductions.
        out = (jnp.sum(gmf * wg_ref[...], axis=-1, keepdims=True)
               + jnp.sum(h * wh_ref[...], axis=-1, keepdims=True)
               + jnp.sum(ctx * wc_ref[...], axis=-1, keepdims=True)
               + bfc_ref[...])
        out_ref[...] = out.astype(out_ref.dtype)

    return kernel


def ncf_forward(x, params, *, user_field_idx, item_field_idx, tile_b=8):
    """x: (B, F) int field indices. Returns (B,) float32 predictions."""
    table = params["table"]            # (V, E)
    offsets = params["offsets"]        # (F,) int32
    bn_eps = params["bn_eps"]
    B, F = x.shape
    V, E = table.shape

    # FeaturesEmbedding: add per-field offsets, then gather rows (Pallas kernel 1).
    gidx = (x.astype(jnp.int32) + offsets[None, :]).astype(jnp.int32)
    flat = embedding_gather(table, gidx)                   # (B, F*E), lane-dense

    # Fold eval-mode BatchNorm1d into each Linear:  W' = W*s,  b' = (b-mean)*s + beta.
    folded = []
    for (w, b, gamma, beta, mean, var) in params["mlp"]:
        scale = gamma / jnp.sqrt(var + bn_eps)
        folded.append((w * scale[None, :], (b - mean) * scale + beta))

    h_last = folded[-1][0].shape[1]
    fc_w = params["fc_w"]              # (2E + h_last,)
    fc_b = params["fc_b"]              # ()
    wg = fc_w[:E].reshape(1, E)
    wh = fc_w[E:E + h_last].reshape(1, h_last)
    wc = fc_w[E + h_last:].reshape(1, E)
    bfc = fc_b.reshape(1, 1)

    assert B % tile_b == 0, "demo requires tile_b | B"
    grid = (B // tile_b,)

    in_specs = [pl.BlockSpec((tile_b, F * E), lambda i: (i, 0))]
    args = [flat]
    for (w, b) in folded:
        in_specs.append(pl.BlockSpec(w.shape, lambda i: (0, 0)))
        in_specs.append(pl.BlockSpec((1, b.shape[0]), lambda i: (0, 0)))
        args.append(w)
        args.append(b.reshape(1, -1))
    for arr in (wg, wh, wc, bfc):
        in_specs.append(pl.BlockSpec(arr.shape, lambda i: (0, 0)))
        args.append(arr)

    kernel = _make_ncf_kernel(F, E, len(folded), user_field_idx, item_field_idx)

    out = pl.pallas_call(
        kernel,
        out_shape=jax.ShapeDtypeStruct((B, 1), jnp.float32),
        grid=grid,
        in_specs=in_specs,
        out_specs=pl.BlockSpec((tile_b, 1), lambda i: (i, 0)),
        compiler_params=pltpu.CompilerParams(dimension_semantics=("parallel",)),
    )(*args)
    # TODO(synk): last_dim != 1 (self.last_classifier) branch not implemented; default last_dim=1.
    return out[:, 0]


# ---------------------------------------------------------------------------
# Pure-JAX reference mirroring the PyTorch forward (eval mode)
# ---------------------------------------------------------------------------
def ncf_ref(x, params, *, user_field_idx, item_field_idx):
    table, offsets, bn_eps = params["table"], params["offsets"], params["bn_eps"]
    E = table.shape[1]
    emb = table[x.astype(jnp.int32) + offsets[None, :]]          # (B, F, E)
    user = emb[:, user_field_idx]
    item = emb[:, item_field_idx]
    gmf = user * item
    ctx = jnp.sum(emb[:, 2:, :], axis=1)
    h = emb.reshape(emb.shape[0], -1)
    for (w, b, gamma, beta, mean, var) in params["mlp"]:
        h = jnp.dot(h, w, precision=jax.lax.Precision.HIGHEST) + b
        h = gamma * (h - mean) / jnp.sqrt(var + bn_eps) + beta   # BatchNorm1d, eval
        h = jnp.maximum(h, 0.0)                                  # ReLU (Dropout = identity)
    z = jnp.concatenate([gmf, h, ctx], axis=1)
    return jnp.dot(z, params["fc_w"], precision=jax.lax.Precision.HIGHEST) + params["fc_b"]


if __name__ == "__main__":
    key = jax.random.PRNGKey(0)
    keys = jax.random.split(key, 24)

    field_dims = np.array([24, 40, 8, 8])          # sum = 80 rows in the embedding table
    F = len(field_dims)
    E = 32                                         # embed_dim  -> F*E = 128 lanes (dense)
    mlp_dims = (64, 32)
    B = 16
    user_field_idx, item_field_idx = 0, 1
    bn_eps = 1e-5

    V = int(field_dims.sum())
    offsets = jnp.asarray(np.concatenate(([0], np.cumsum(field_dims)[:-1])), dtype=jnp.int32)

    table = 0.1 * jax.random.normal(keys[0], (V, E), dtype=jnp.float32)

    mlp_params = []
    in_dim = F * E
    k = 1
    for h in mlp_dims:
        w = jax.random.normal(keys[k], (in_dim, h), jnp.float32) / np.sqrt(in_dim); k += 1
        b = 0.01 * jax.random.normal(keys[k], (h,), jnp.float32); k += 1
        gamma = 1.0 + 0.1 * jax.random.normal(keys[k], (h,), jnp.float32); k += 1
        beta = 0.1 * jax.random.normal(keys[k], (h,), jnp.float32); k += 1
        mean = 0.05 * jax.random.normal(keys[k], (h,), jnp.float32); k += 1
        var = jax.random.uniform(keys[k], (h,), jnp.float32, 0.5, 1.5); k += 1
        mlp_params.append((w, b, gamma, beta, mean, var))
        in_dim = h

    fc_in = 2 * E + mlp_dims[-1]
    fc_w = 0.1 * jax.random.normal(keys[k], (fc_in,), jnp.float32); k += 1
    fc_b = 0.1 * jax.random.normal(keys[k], (), jnp.float32); k += 1

    cols = []
    for f in range(F):
        cols.append(jax.random.randint(keys[k], (B, 1), 0, int(field_dims[f]), dtype=jnp.int32))
        k += 1
    x = jnp.concatenate(cols, axis=1)              # (B, F) field indices

    params = dict(table=table, offsets=offsets, mlp=mlp_params,
                  fc_w=fc_w, fc_b=fc_b, bn_eps=bn_eps)

    out = ncf_forward(x, params, user_field_idx=user_field_idx,
                      item_field_idx=item_field_idx, tile_b=8)
    out = jax.block_until_ready(out)

    ref = ncf_ref(x, params, user_field_idx=user_field_idx, item_field_idx=item_field_idx)
    assert out.shape == (B,), out.shape
    assert jnp.allclose(out, ref, rtol=2e-3, atol=2e-3), (out, ref)
    print("KERNEL_OK")
</pallas_src>

<mosaic_0001>
module attributes {stable_mosaic.version = 11 : i64} {
  func.func @_gather_kernel(%arg0: i32, %arg1: memref<16x4xi32, #tpu.memory_space<smem>>, %arg2: memref<1x1x32xf32, #tpu.memory_space<vmem>>, %arg3: memref<1x1x32xf32, #tpu.memory_space<vmem>>, %arg4: memref<1x1x32xf32, #tpu.memory_space<vmem>>, %arg5: memref<1x1x32xf32, #tpu.memory_space<vmem>>, %arg6: memref<1x1x128xf32, #tpu.memory_space<vmem>>) attributes {dimension_semantics = [#tpu.dimension_semantics<arbitrary>], iteration_bounds = array<i64: 16>, scalar_prefetch = 1 : i64, scratch_operands = 0 : i64, tpu.core_type = #tpu.core_type<tc>, window_params = [{transform_indices = @transform_0, window_bounds = array<i64: 1, 1, 32>}, {transform_indices = @transform_1, window_bounds = array<i64: 1, 1, 32>}, {transform_indices = @transform_2, window_bounds = array<i64: 1, 1, 32>}, {transform_indices = @transform_3, window_bounds = array<i64: 1, 1, 32>}, {transform_indices = @transform_4, window_bounds = array<i64: 1, 1, 128>}]} {
    %c0 = arith.constant 0 : index
    %c0_0 = arith.constant 0 : index
    %c0_1 = arith.constant 0 : index
    %0 = vector.load %arg2[%c0, %c0_0, %c0_1] : memref<1x1x32xf32, #tpu.memory_space<vmem>>, vector<1x1x32xf32>
    %c0_2 = arith.constant 0 : index
    %c0_3 = arith.constant 0 : index
    %c0_4 = arith.constant 0 : index
    %1 = vector.load %arg3[%c0_2, %c0_3, %c0_4] : memref<1x1x32xf32, #tpu.memory_space<vmem>>, vector<1x1x32xf32>
    %c0_5 = arith.constant 0 : index
    %c0_6 = arith.constant 0 : index
    %c0_7 = arith.constant 0 : index
    %2 = vector.load %arg4[%c0_5, %c0_6, %c0_7] : memref<1x1x32xf32, #tpu.memory_space<vmem>>, vector<1x1x32xf32>
    %c0_8 = arith.constant 0 : index
    %c0_9 = arith.constant 0 : index
    %c0_10 = arith.constant 0 : index
    %3 = vector.load %arg5[%c0_8, %c0_9, %c0_10] : memref<1x1x32xf32, #tpu.memory_space<vmem>>, vector<1x1x32xf32>
    %4 = tpu.concatenate %0, %1, %2, %3 in 2 : vector<1x1x32xf32>, vector<1x1x32xf32>, vector<1x1x32xf32>, vector<1x1x32xf32> -> vector<1x1x128xf32>
    %c0_11 = arith.constant 0 : index
    %c0_12 = arith.constant 0 : index
    %c0_13 = arith.constant 0 : index
    %5 = vector.load %arg6[%c0_11, %c0_12, %c0_13] : memref<1x1x128xf32, #tpu.memory_space<vmem>>, vector<1x1x128xf32>
    tpu.vector_store %arg6[%c0_11, %c0_12, %c0_13], %4 {strides = array<i32>} : memref<1x1x128xf32, #tpu.memory_space<vmem>>, vector<1x1x128xf32>,
    return
  }
  func.func @transform_0(%arg0: i32, %arg1: memref<16x4xi32, #tpu.memory_space<smem>>) -> (i32, i32, i32) {
    %0 = arith.index_cast %arg0 : i32 to index
    %c0 = arith.constant 0 : index
    %1 = memref.load %arg1[%0, %c0] : memref<16x4xi32, #tpu.memory_space<smem>>
    %c0_i32 = arith.constant 0 : i32
    %c0_i32_0 = arith.constant 0 : i32
    %c0_i32_1 = arith.constant 0 : i32
    return %1, %c0_i32, %c0_i32_0 : i32, i32, i32
  }
  func.func @transform_1(%arg0: i32, %arg1: memref<16x4xi32, #tpu.memory_space<smem>>) -> (i32, i32, i32) {
    %0 = arith.index_cast %arg0 : i32 to index
    %c1 = arith.constant 1 : index
    %1 = memref.load %arg1[%0, %c1] : memref<16x4xi32, #tpu.memory_space<smem>>
    %c0_i32 = arith.constant 0 : i32
    %c0_i32_0 = arith.constant 0 : i32
    %c0_i32_1 = arith.constant 0 : i32
    return %1, %c0_i32, %c0_i32_0 : i32, i32, i32
  }
  func.func @transform_2(%arg0: i32, %arg1: memref<16x4xi32, #tpu.memory_space<smem>>) -> (i32, i32, i32) {
    %0 = arith.index_cast %arg0 : i32 to index
    %c2 = arith.constant 2 : index
    %1 = memref.load %arg1[%0, %c2] : memref<16x4xi32, #tpu.memory_space<smem>>
    %c0_i32 = arith.constant 0 : i32
    %c0_i32_0 = arith.constant 0 : i32
    %c0_i32_1 = arith.constant 0 : i32
    return %1, %c0_i32, %c0_i32_0 : i32, i32, i32
  }
  func.func @transform_3(%arg0: i32, %arg1: memref<16x4xi32, #tpu.memory_space<smem>>) -> (i32, i32, i32) {
    %0 = arith.index_cast %arg0 : i32 to index
    %c3 = arith.constant 3 : index
    %1 = memref.load %arg1[%0, %c3] : memref<16x4xi32, #tpu.memory_space<smem>>
    %c0_i32 = arith.constant 0 : i32
    %c0_i32_0 = arith.constant 0 : i32
    %c0_i32_1 = arith.constant 0 : i32
    return %1, %c0_i32, %c0_i32_0 : i32, i32, i32
  }
  func.func @transform_4(%arg0: i32, %arg1: memref<16x4xi32, #tpu.memory_space<smem>>) -> (i32, i32, i32) {
    %c0_i32 = arith.constant 0 : i32
    %c0_i32_0 = arith.constant 0 : i32
    %c0_i32_1 = arith.constant 0 : i32
    return %arg0, %c0_i32, %c0_i32_0 : i32, i32, i32
  }
}

</mosaic_0001>

<bundles_post_ra>
// kernel: tpu_custom_call.1
= control target key start
LH: loop header
LB: loop body
LE: loop exit
PB: predicated region body
PF: predicated region fallthrough
CT: control target
= control target key end

     0   :  { %s585_s21 = smov [#allocation3]   ;;  %s715_s0 = inlined_call_operand.vmem [shape: s32[16,4], index: 0, kind: input, shape index: {}]   ;;  %s716_s1 = inlined_call_operand.vmem [shape: f32[80,1,32], index: 1, kind: input, shape index: {}]   ;;  %s717_s2 = inlined_call_operand.vmem [shape: f32[80,1,32], index: 2, kind: input, shape index: {}]   ;;  %s718_s3 = inlined_call_operand.vmem [shape: f32[80,1,32], index: 3, kind: input, shape index: {}]   ;;  %s719_s4 = inlined_call_operand.vmem [shape: f32[80,1,32], index: 4, kind: input, shape index: {}]   ;;  %s720_s5 = inlined_call_operand.hbm [shape: f32[16,1,128], index: 5, kind: output, shape index: {}]  }
   0x1   :  { %s11_s20 = sshll.u32 %s715_s0, 4  ;;  %s12_s20 = int_to_ptr.vmem [resolvable:$true] %s11_s20 }
   0x2   :  { %14 = dma.vmem_to_smem %s12_s20, 256, %s585_s21, [#allocation2] }
   0x3   :  { %563 = dma.done.wait [#allocation2], 256 }
   0x4   :  { %564 = vsyncadd [#allocation2], 4294967040 }
   0x5   :  { %17 = sfence }
   0x6   :  { %18 = vsyncpa [#allocation5], 0 }
   0x7   :  { %20 = vsyncpa [#allocation5 + $0x1], 0  ;;  %s622_s22 = smov 0   ;;  %s624_s23 = smov 0  }
   0x8   :  { %s626_s24 = smov 0   ;;  %s628_s25 = smov 0  }
   0x9 LB: > { %s643_s0 = sadd.s32 4294967295, %s583_s25   ;;  %s435_s26 = sadd.s32 4294967294, %s583_s25   ;;  %s583_s25 = sphi %s628_s25, %s726_s25   ;;  %s579_s24 = sphi %s626_s24, %s725_s24   ;;  %s575_s23 = sphi %s624_s23, %s724_s23   ;;  %s571_s22 = sphi %s622_s22, %s723_s22  }
   0xa   : > { %s647_s27 = sadd.s32 1, %s583_s25   ;;  %s159_s28 = sadd.s32 1, %s579_s24 }
   0xb   : > { %s156_s29 = ssub.s32 %s583_s25, %s647_s27  ;;  %p169_p0 = scmp.ne.s32.totalorder %s579_s24, %s575_s23 }
   0xc   : > { %p157_p1 = scmp.eq.s32.totalorder %s156_s29, 0  ;;  %p170_p2 = scmp.eq.s32.totalorder %s643_s0, 15 }
   0xd   : > { %p175_p3 = scmp.ne.s32.totalorder %s575_s23, %s571_s22  ;;  %p176_p4 = scmp.eq.s32.totalorder %s435_s26, 15 }
   0xe   : > { %s658_s30 = scalar_select %p157_p1, %s579_s24, %s159_s28  }
   0xf   : > { %p660_p5 = por %p170_p2, %p169_p0  ;;  %p664_p6 = por %p176_p4, %p175_p3 }
  0x10   : > { %p446_p7 = scmp.ge.s32.totalorder %s583_s25, 1  ;;  %p240_p8 = scmp.lt.s32.totalorder %s583_s25, 17 }
  0x12   : > { %p241_p9 = pnand %p446_p7, %p240_p8 }
  0x13   : > { %s447_s8 = sshll.u32 (!%p241_p9), %s643_s0, 7  ;;  %s586_s21 = smov (!%p241_p9), 32  }
  0x14   : > { %244 = sbr.rel (%p241_p9) target bundleno = 160 (0xa0), region = 36  ;;  %s291_s9 = sadd.s32 (!%p241_p9), 1, %s447_s8 }
  0x15   : > { %s300_s10 = sadd.s32 (!%p241_p9), 2, %s447_s8  ;;  %s292_s11 = sld [smem:[#allocation3 + %s291_s9]] (!%p241_p9) }
  0x16   : > { %s301_s12 = sld [smem:[#allocation3 + %s300_s10]] (!%p241_p9)  ;;  %s309_s13 = sadd.s32 (!%p241_p9), 3, %s447_s8 }
  0x17   : > { %s310_s14 = sld [smem:[#allocation3 + %s309_s13]] (!%p241_p9)  ;;  %s587_s9 = smov (!%p241_p9), 96  }
  0x18   : > { %s588_s10 = smov (!%p241_p9), 64   ;;  %s281_s13 = sand.u32 (!%p241_p9), 1, %s575_s23  }
  0x19   : > { %s352_s19 = scalar_lea.hbm %s720_s5, %s643_s0  ;;  %vm336_vm0 = vcmask 261120   ;;  %vm338_vm1 = vcmask 523264   ;;  %vm340_vm2 = vcmask 785408  }
  0x1b   : > { %p293_p10 = scmp.lt.s32.totalorder %s292_s11, 79 }
  0x1c   : > { %p302_p11 = scmp.lt.s32.totalorder %s301_s12, 79 }
  0x1d   : > { %s728_s11 = smov (!%p293_p10, %s292_s11), 79  ;;  %p311_p12 = scmp.lt.s32.totalorder %s310_s14, 79 }
  0x1e   : > { %s730_s12 = smov (!%p302_p11, %s301_s12), 79  ;;  %s295_s17 = scalar_lea.vmem %s717_s2, %s728_s11 }
  0x1f   : > { %v504_v0 = vld [vmem:[%s295_s17] ss:$0 sm:$0xff]  ;;  %s304_s20 = scalar_lea.vmem %s718_s3, %s730_s12  ;;  %s732_s14 = smov (!%p311_p12, %s310_s14), 79 }
  0x20   : > { %323 = vrot.lane.b32.xlu0 %v504_v0, %s586_s21  ;;  %s313_s29 = scalar_lea.vmem %s719_s4, %s732_s14  ;;  %v505_v2 = vld [vmem:[%s304_s20] ss:$0 sm:$0xff]  ;;  %s284_s11 = sld [smem:[#allocation3 + %s447_s8]] }
  0x21   : > { %v506_v1 = vld [vmem:[%s313_s29] ss:$0 sm:$0xff]  ;;  %s282_s14 = scalar_lea.vmem [#allocation4], %s281_s13  ;;  %s356_s21 = sshll.u32 %s352_s19, 4  ;;  %s357_s21 = int_to_ptr.hbm [resolvable:$true] %s356_s21 }
  0x22   : > { %333 = vrot.lane.b32.xlu1 %v506_v1, %s587_s9  ;;  %s354_s20 = sshll.u32 %s282_s14, 4  ;;  %s344_s8 = scalar_lea.sflag [#allocation5], %s281_s13  ;;  %s355_s20 = int_to_ptr.vmem [resolvable:$true] %s354_s20 }
  0x23   : > { %s533_s26 = sshra.s32 %s357_s21, 4  ;;  %s539_s9 = scalar_lea.hbm %s720_s5, 16  ;;  %s534_s26 = int_to_ptr.hbm [resolvable:$true] %s533_s26 }
  0x24   : > { %s535_s0 = scalar_lea.hbm %s534_s26, 1  ;;  %p540_p3 = scmp.lt.s32.totalorder %s534_s26, %s720_s5 }
  0x25   : > { %p536_p0 = scmp.ne.s32.totalorder %s534_s26, %s535_s0  ;;  %p541_p4 = scmp.lt.s32.totalorder %s539_s9, %s535_s0 }
  0x26   : > { %p285_p13 = scmp.lt.s32.totalorder %s284_s11, 79 }
  0x27   : > { %p537_p1 = pnand %p536_p0, %p660_p5  ;;  %p542_p7 = por %p541_p4, %p540_p3 }
  0x28   : > { %328 = vrot.lane.b32.xlu0 %v505_v2, %s588_s10  ;;  %s734_s11 = smov (!%p285_p13, %s284_s11), 79 }
  0x29   : > { %s287_s16 = scalar_lea.vmem %s716_s1, %s734_s11  ;;  %p538_p2 = pneg %p537_p1 }
  0x2a   : > { %v317_v4 = vld [vmem:[%s287_s16] sm:$0x1] }
  0x2b   : > { %p543_p8 = pnand %p542_p7, %p538_p2 }
  0x92   : > { %v324_v3 = vpop.permute.xlu0 %323 }
  0x93   : > { %v337_v6 = vsel %vm336_vm0, %v317_v4, %v324_v3 }
  0x94   : > { %v334_v5 = vpop.permute.xlu1 %333 }
  0x9a   : > { %v329_v7 = vpop.permute.xlu0 %328 }
  0x9b   : > { %v339_v8 = vsel %vm338_vm1, %v337_v6, %v329_v7 }
  0x9c   : > { %v341_v9 = vsel %vm340_vm2, %v339_v8, %v334_v5 }
  0x9d   : > { %342 = vst [vmem:[%s282_s14] sm:$0x1] %v341_v9 }
  0x9e   : > { %546 = shalt.err (!%p543_p8)
}
  0x9f   : > { %461 = dma.vmem_to_hbm [thread:$0]  (%p660_p5), %s355_s20, 16, %s357_s21, %s344_s8  }
  0xa0 PF: > { %p467_p9 = scmp.ge.s32.totalorder %s583_s25, 2  ;;  %s368_s13 = sand.u32 1, %s571_s22  }
  0xa1   : > { %s369_s12 = scalar_lea.sflag [#allocation5], %s368_s13 }
  0xa2   : > { %p464_p10 = pnand %p467_p9, %p664_p6 }
  0xa4   : > { %p465_p11 = pneg %p464_p10 }
  0xa6   : > { %566 = dma.done.wait (%p465_p11), %s369_s12, 16  }
  0xa7   : > { %568 = vsyncadd (%p465_p11), %s369_s12, 4294967280  ;;  %p23_p12 = scmp.ge.s32.totalorder %s647_s27, 18   ;;  %s723_s22 = smov %s575_s23 }
  0xa8   : > { %s724_s23 = smov %s579_s24  ;;  %s725_s24 = smov %s658_s30 }
  0xa9   : > { %s726_s25 = smov %s647_s27  ;;  %25 = sbr.rel (!%p23_p12) target bundleno = 9 (0x9), region = 80 }
  0xae   :  { %374 = vsyncpa [#allocation5], 1 }
  0xaf   :  { %376 = vsyncpa [#allocation5 + $0x1], 1 }

</bundles_post_ra>
